<compile_context>
chip_gen: v7x
topology: tpu7x:2x2x1
jax: 0.10.0
libtpu: 0.0.40
codegen_flags: <defaults>
</compile_context>

<pallas_src>
import functools
import math

import jax
import jax.numpy as jnp
from jax.experimental import pallas as pl
from jax.experimental.pallas import tpu as pltpu


def _fdm_kernel(z_ref, a_ref,
                ae_w1_ref, ae_b1_ref,
                wz_ref, wh_ref, bt_ref,
                em_w2_ref, em_b2_ref, em_w3_ref, em_b3_ref,
                out_ref, *, z_dim):
    z = z_ref[...]                      # (TB, z_dim)   f32
    a = a_ref[...]                      # (TB, act_dim) f32
    cdt = ae_w1_ref.dtype               # MXU operand dtype (bf16)

    def mm(x, w_ref):
        return jnp.dot(x.astype(cdt), w_ref[...],
                       preferred_element_type=jnp.float32)

    # --- act_encoder layer 1 (layer 2 is pre-folded into wh/bt) ---
    h = jnp.maximum(mm(a, ae_w1_ref) + ae_b1_ref[...], 0.0)          # (TB, hidden)

    # --- fused forward_predictor + error layer-1 + folded act-encoder layer-2 ---
    # t = [ z_lin | 0 | e1_pre_relu ]; two independent dots, no lane concat.
    t = mm(z, wz_ref) + mm(h, wh_ref) + bt_ref[...]                  # (TB, 2*z_dim+hidden)

    # --- error_model tail ---
    # em_w2 is zero-row-padded for the first 2*z_dim lanes, so relu over the whole
    # slab is exact (z_lin lanes contribute nothing).
    e = jnp.maximum(t, 0.0)
    e = jnp.maximum(mm(e, em_w2_ref) + em_b2_ref[...], 0.0)          # (TB, hidden)
    ee = mm(e, em_w3_ref) + em_b3_ref[...]                           # (TB, 2*z_dim) = [err|err]

    # [z_next | err] = [err|err] + [z_lin | 0]  (lanes stay in place; no relayout)
    out_ref[...] = (ee + t[:, :2 * z_dim]).astype(out_ref.dtype)


def _choose_block_b(B, block_b):
    """Batch tile: single step for tiny B; ~2 steps at moderate B so the
    'parallel' grid axis can shard across v7x's two TensorCores; block_b cap
    for large B to amortize the ~0.35 us per-grid-step overhead."""
    if B <= 64:
        return B
    if B <= 2 * block_b:
        tb = -(-B // 2)                      # cdiv(B, 2)
        return max(8, ((tb + 7) // 8) * 8)   # round up to a multiple of 8
    return block_b


def deterministic_forward_model(z, a, params, *, block_b=2048, out_dtype=jnp.float32):
    """Fused Pallas call, tiled over the batch axis.

    Returns (z_next, err). Note: at very small B (e.g. single env steps) the
    call is dominated by fixed overhead; batch multiple steps before calling.
    """
    B, z_dim = z.shape
    act_dim = a.shape[1]

    TB = _choose_block_b(B, block_b)
    grid = (pl.cdiv(B, TB),)

    def act_spec(feat):
        return pl.BlockSpec((TB, feat), lambda i: (i, 0))

    def resident_spec(arr):                  # whole weight stays VMEM-resident
        return pl.BlockSpec(arr.shape, lambda i: (0, 0))

    in_specs = [act_spec(z_dim), act_spec(act_dim)] + [resident_spec(p) for p in params]
    out_spec = act_spec(2 * z_dim)

    # advisory cost hint: weight matrices are params 0, 2, 3, 5, 7
    weight_ids = (0, 2, 3, 5, 7)
    flops = 2 * B * sum(math.prod(params[i].shape) for i in weight_ids)
    bytes_accessed = (
        math.prod(z.shape) * 4 + math.prod(a.shape) * 4
        + B * 2 * z_dim * jnp.dtype(out_dtype).itemsize
        + sum(math.prod(p.shape) * jnp.dtype(p.dtype).itemsize for p in params))

    kernel = functools.partial(_fdm_kernel, z_dim=z_dim)
    out = pl.pallas_call(
        kernel,
        out_shape=jax.ShapeDtypeStruct((B, 2 * z_dim), out_dtype),
        grid=grid,
        in_specs=in_specs,
        out_specs=out_spec,
        compiler_params=pltpu.CompilerParams(
            dimension_semantics=("parallel",)),
        cost_estimate=pl.CostEstimate(
            flops=flops, transcendentals=0, bytes_accessed=bytes_accessed),
    )(z, a, *params)

    return out[:, :z_dim], out[:, z_dim:]


def _linear_params(key, fan_in, fan_out):
    """PyTorch-style init U(-1/sqrt(fan_in), 1/sqrt(fan_in)); weight already (in, out)."""
    kw, kb = jax.random.split(key)
    bound = 1.0 / math.sqrt(fan_in)
    w = jax.random.uniform(kw, (fan_in, fan_out), jnp.float32, -bound, bound)
    b = jax.random.uniform(kb, (1, fan_out), jnp.float32, -bound, bound)
    return w, b


def make_params(key, action_dim, z_dim, u_dim, hidden_dim, *,
                error_weight=1.0, weight_dtype=jnp.bfloat16):
    """Returns (kernel_params, raw_f32_params).

    kernel_params (all fusions are algebraically exact, done once in f32):
      * forward_predictor and error_model layer-1 fused into one slab matmul
        whose output is laid out [ z_lin | zeros(z_dim) | e1 ],
      * act_encoder layer-2 folded through that slab (u enters it linearly),
      * error_model layer-2 zero-row-padded so relu(slab) feeds it directly,
      * error_model layer-3 duplicated ([W3|W3]) with error_weight folded in,
      * weight matrices cast to bf16, biases kept f32.
    raw_f32_params: unfused f32 params mirroring the PyTorch module.
    """
    keys = jax.random.split(key, 6)
    ae_w1, ae_b1 = _linear_params(keys[0], action_dim, hidden_dim)
    ae_w2, ae_b2 = _linear_params(keys[1], hidden_dim, u_dim)
    fp_w, fp_b = _linear_params(keys[2], z_dim + u_dim, z_dim)
    em_w1, em_b1 = _linear_params(keys[3], z_dim + u_dim, hidden_dim)
    em_w2, em_b2 = _linear_params(keys[4], hidden_dim, hidden_dim)
    em_w3, em_b3 = _linear_params(keys[5], hidden_dim, z_dim)

    raw = (ae_w1, ae_b1, ae_w2, ae_b2, fp_w, fp_b,
           em_w1, em_b1, em_w2, em_b2, em_w3, em_b3)

    # slab layout: t = [ z_lin | zeros(z_dim) | e1 ]  (width = 2*z_dim + hidden)
    zero_mid_w = jnp.zeros((z_dim + u_dim, z_dim), jnp.float32)
    zero_mid_b = jnp.zeros((1, z_dim), jnp.float32)
    slab_w = jnp.concatenate([fp_w, zero_mid_w, em_w1], axis=1)  # (z_dim+u_dim, 2z+h)
    slab_b = jnp.concatenate([fp_b, zero_mid_b, em_b1], axis=1)  # (1, 2z+h)

    # fold act_encoder layer-2 through the slab (u = h @ ae_w2 + ae_b2 is linear)
    w_z = slab_w[:z_dim, :]                          # (z_dim,  2z+h)
    w_h = ae_w2 @ slab_w[z_dim:, :]                  # (hidden, 2z+h)
    b_t = slab_b + ae_b2 @ slab_w[z_dim:, :]         # (1,      2z+h)

    # error layer-2: zero rows for the [z_lin | zeros] lanes of relu(t)
    em_w2_aug = jnp.concatenate(
        [jnp.zeros((2 * z_dim, hidden_dim), jnp.float32), em_w2], axis=0)

    # last layer duplicated -> emits [err | err]; error_weight folded in
    w3 = em_w3 * error_weight
    b3 = em_b3 * error_weight
    em_w3_dual = jnp.concatenate([w3, w3], axis=1)   # (hidden, 2*z_dim)
    em_b3_dual = jnp.concatenate([b3, b3], axis=1)   # (1, 2*z_dim)

    wd = weight_dtype
    kernel_params = (ae_w1.astype(wd), ae_b1,
                     w_z.astype(wd), w_h.astype(wd), b_t,
                     em_w2_aug.astype(wd), em_b2,
                     em_w3_dual.astype(wd), em_b3_dual)
    return kernel_params, raw


def reference_forward_matched(z, a, params, *, z_dim):
    """Same math / same bf16 operand precision / same fused layout as the kernel."""
    (ae_w1, ae_b1, wz, wh, bt, em_w2a, em_b2, em_w3d, em_b3d) = params
    cdt = ae_w1.dtype
    dot = lambda x, w: jnp.dot(x.astype(cdt), w, preferred_element_type=jnp.float32)
    h = jnp.maximum(dot(a, ae_w1) + ae_b1, 0.0)
    t = dot(z, wz) + dot(h, wh) + bt
    e = jnp.maximum(t, 0.0)
    e = jnp.maximum(dot(e, em_w2a) + em_b2, 0.0)
    out = dot(e, em_w3d) + em_b3d + t[:, :2 * z_dim]
    return out[:, :z_dim], out[:, z_dim:]


def reference_forward_f32(z, a, raw_params, *, error_weight):
    """Exact f32, un-fused math mirroring the PyTorch module's forward()."""
    (ae_w1, ae_b1, ae_w2, ae_b2, fp_w, fp_b,
     em_w1, em_b1, em_w2, em_b2, em_w3, em_b3) = raw_params
    h = jnp.maximum(a @ ae_w1 + ae_b1, 0.0)
    u = h @ ae_w2 + ae_b2
    zu = jnp.concatenate([z, u], axis=1)
    z_lin = zu @ fp_w + fp_b
    e = jnp.maximum(zu @ em_w1 + em_b1, 0.0)
    e = jnp.maximum(e @ em_w2 + em_b2, 0.0)
    e = error_weight * (e @ em_w3 + em_b3)
    return z_lin + e, e


if __name__ == "__main__":
    # small shapes consistent with the module's forward()
    B = 8            # batch
    action_dim = 6   # action_shape[0]
    z_dim = 32
    u_dim = 16       # act_emb_dim (use_act_encoder=True)
    hidden_dim = 32
    error_weight = 0.5

    key = jax.random.PRNGKey(0)
    k_z, k_a, k_p = jax.random.split(key, 3)
    z = jax.random.normal(k_z, (B, z_dim), jnp.float32)
    a = jax.random.normal(k_a, (B, action_dim), jnp.float32)
    params, raw_params = make_params(k_p, action_dim, z_dim, u_dim, hidden_dim,
                                     error_weight=error_weight)

    z_next, err = deterministic_forward_model(z, a, params)
    jax.block_until_ready((z_next, err))
    assert z_next.shape == (B, z_dim) and err.shape == (B, z_dim)

    # matched-precision reference (same bf16 weights / fused layout)
    zn_m, e_m = reference_forward_matched(z, a, params, z_dim=z_dim)
    assert jnp.allclose(z_next, zn_m, atol=2e-3, rtol=2e-3)
    assert jnp.allclose(err, e_m, atol=2e-3, rtol=2e-3)

    # exact f32 un-fused reference matching the PyTorch module (bf16-rounding tolerance)
    zn_f, e_f = reference_forward_f32(z, a, raw_params, error_weight=error_weight)
    assert jnp.allclose(z_next, zn_f, atol=5e-2, rtol=5e-2)
    assert jnp.allclose(err, e_f, atol=5e-2, rtol=5e-2)

    # optional bf16-output path (halves output HBM bytes when the consumer tolerates it)
    zn_h, e_h = deterministic_forward_model(z, a, params, out_dtype=jnp.bfloat16)
    jax.block_until_ready((zn_h, e_h))
    assert zn_h.dtype == jnp.bfloat16 and e_h.dtype == jnp.bfloat16
    assert jnp.allclose(zn_h.astype(jnp.float32), z_next, atol=2e-2, rtol=2e-2)
    assert jnp.allclose(e_h.astype(jnp.float32), err, atol=2e-2, rtol=2e-2)

    # TODO(synk): curvature() / get_jacobian() need autograd (torch.autograd.grad) and
    # compute_logits() / log() are separate training/logging utilities; only forward()
    # is kernelized.
    print("KERNEL_OK")
</pallas_src>

<mosaic_0001>
module attributes {stable_mosaic.version = 11 : i64} {
  func.func @_fdm_kernel(%arg0: i32, %arg1: memref<8x32xf32, #tpu.memory_space<vmem>>, %arg2: memref<8x6xf32, #tpu.memory_space<vmem>>, %arg3: memref<6x32xbf16, #tpu.memory_space<vmem>>, %arg4: memref<1x32xf32, #tpu.memory_space<vmem>>, %arg5: memref<32x96xbf16, #tpu.memory_space<vmem>>, %arg6: memref<32x96xbf16, #tpu.memory_space<vmem>>, %arg7: memref<1x96xf32, #tpu.memory_space<vmem>>, %arg8: memref<96x32xbf16, #tpu.memory_space<vmem>>, %arg9: memref<1x32xf32, #tpu.memory_space<vmem>>, %arg10: memref<32x64xbf16, #tpu.memory_space<vmem>>, %arg11: memref<1x64xf32, #tpu.memory_space<vmem>>, %arg12: memref<8x64xf32, #tpu.memory_space<vmem>>) attributes {dimension_semantics = [#tpu.dimension_semantics<parallel>], iteration_bounds = array<i64: 1>, scalar_prefetch = 0 : i64, scratch_operands = 0 : i64, tpu.core_type = #tpu.core_type<tc>, window_params = [{transform_indices = @transform_0, window_bounds = array<i64: 8, 32>}, {transform_indices = @transform_1, window_bounds = array<i64: 8, 6>}, {pipeline_mode = #tpu.pipeline_mode<synchronous>, transform_indices = @transform_2, window_bounds = array<i64: 6, 32>}, {pipeline_mode = #tpu.pipeline_mode<synchronous>, transform_indices = @transform_3, window_bounds = array<i64: 1, 32>}, {pipeline_mode = #tpu.pipeline_mode<synchronous>, transform_indices = @transform_4, window_bounds = array<i64: 32, 96>}, {pipeline_mode = #tpu.pipeline_mode<synchronous>, transform_indices = @transform_5, window_bounds = array<i64: 32, 96>}, {pipeline_mode = #tpu.pipeline_mode<synchronous>, transform_indices = @transform_6, window_bounds = array<i64: 1, 96>}, {pipeline_mode = #tpu.pipeline_mode<synchronous>, transform_indices = @transform_7, window_bounds = array<i64: 96, 32>}, {pipeline_mode = #tpu.pipeline_mode<synchronous>, transform_indices = @transform_8, window_bounds = array<i64: 1, 32>}, {pipeline_mode = #tpu.pipeline_mode<synchronous>, transform_indices = @transform_9, window_bounds = array<i64: 32, 64>}, {pipeline_mode = #tpu.pipeline_mode<synchronous>, transform_indices = @transform_10, window_bounds = array<i64: 1, 64>}, {transform_indices = @transform_11, window_bounds = array<i64: 8, 64>}]} {
    %c0 = arith.constant 0 : index
    %c0_0 = arith.constant 0 : index
    %0 = vector.load %arg1[%c0, %c0_0] : memref<8x32xf32, #tpu.memory_space<vmem>>, vector<8x32xf32>
    %c0_1 = arith.constant 0 : index
    %c0_2 = arith.constant 0 : index
    %1 = vector.load %arg2[%c0_1, %c0_2] : memref<8x6xf32, #tpu.memory_space<vmem>>, vector<8x6xf32>
    %2 = arith.truncf %1 : vector<8x6xf32> to vector<8x6xbf16>
    %c0_3 = arith.constant 0 : index
    %c0_4 = arith.constant 0 : index
    %3 = vector.load %arg3[%c0_3, %c0_4] : memref<6x32xbf16, #tpu.memory_space<vmem>>, vector<6x32xbf16>
    %cst = arith.constant dense<0.000000e+00> : vector<8x32xf32>
    %4 = tpu.matmul %2, %3, %cst {dimension_numbers = #tpu.dot_dimension_numbers<[1], [0], [0], [1], [0, 0, 1, 1], [], []>} : vector<8x6xbf16>, vector<6x32xbf16>, vector<8x32xf32> -> vector<8x32xf32>
    %c0_5 = arith.constant 0 : index
    %c0_6 = arith.constant 0 : index
    %5 = vector.load %arg4[%c0_5, %c0_6] : memref<1x32xf32, #tpu.memory_space<vmem>>, vector<1x32xf32>
    %6 = vector.broadcast %5 : vector<1x32xf32> to vector<8x32xf32>
    %7 = arith.addf %4, %6 : vector<8x32xf32>
    %cst_7 = arith.constant 0.000000e+00 : f32
    %8 = vector.broadcast %cst_7 : f32 to vector<8x32xf32>
    %9 = arith.maximumf %7, %8 : vector<8x32xf32>
    %10 = arith.truncf %0 : vector<8x32xf32> to vector<8x32xbf16>
    %c0_8 = arith.constant 0 : index
    %c0_9 = arith.constant 0 : index
    %11 = vector.load %arg5[%c0_8, %c0_9] : memref<32x96xbf16, #tpu.memory_space<vmem>>, vector<32x96xbf16>
    %cst_10 = arith.constant dense<0.000000e+00> : vector<8x96xf32>
    %12 = tpu.matmul %10, %11, %cst_10 {dimension_numbers = #tpu.dot_dimension_numbers<[1], [0], [0], [1], [0, 0, 1, 1], [], []>} : vector<8x32xbf16>, vector<32x96xbf16>, vector<8x96xf32> -> vector<8x96xf32>
    %13 = arith.truncf %9 : vector<8x32xf32> to vector<8x32xbf16>
    %c0_11 = arith.constant 0 : index
    %c0_12 = arith.constant 0 : index
    %14 = vector.load %arg6[%c0_11, %c0_12] : memref<32x96xbf16, #tpu.memory_space<vmem>>, vector<32x96xbf16>
    %cst_13 = arith.constant dense<0.000000e+00> : vector<8x96xf32>
    %15 = tpu.matmul %13, %14, %cst_13 {dimension_numbers = #tpu.dot_dimension_numbers<[1], [0], [0], [1], [0, 0, 1, 1], [], []>} : vector<8x32xbf16>, vector<32x96xbf16>, vector<8x96xf32> -> vector<8x96xf32>
    %16 = arith.addf %12, %15 : vector<8x96xf32>
    %c0_14 = arith.constant 0 : index
    %c0_15 = arith.constant 0 : index
    %17 = vector.load %arg7[%c0_14, %c0_15] : memref<1x96xf32, #tpu.memory_space<vmem>>, vector<1x96xf32>
    %18 = vector.broadcast %17 : vector<1x96xf32> to vector<8x96xf32>
    %19 = arith.addf %16, %18 : vector<8x96xf32>
    %cst_16 = arith.constant 0.000000e+00 : f32
    %20 = vector.broadcast %cst_16 : f32 to vector<8x96xf32>
    %21 = arith.maximumf %19, %20 : vector<8x96xf32>
    %22 = arith.truncf %21 : vector<8x96xf32> to vector<8x96xbf16>
    %c0_17 = arith.constant 0 : index
    %c0_18 = arith.constant 0 : index
    %23 = vector.load %arg8[%c0_17, %c0_18] : memref<96x32xbf16, #tpu.memory_space<vmem>>, vector<96x32xbf16>
    %cst_19 = arith.constant dense<0.000000e+00> : vector<8x32xf32>
    %24 = tpu.matmul %22, %23, %cst_19 {dimension_numbers = #tpu.dot_dimension_numbers<[1], [0], [0], [1], [0, 0, 1, 1], [], []>} : vector<8x96xbf16>, vector<96x32xbf16>, vector<8x32xf32> -> vector<8x32xf32>
    %c0_20 = arith.constant 0 : index
    %c0_21 = arith.constant 0 : index
    %25 = vector.load %arg9[%c0_20, %c0_21] : memref<1x32xf32, #tpu.memory_space<vmem>>, vector<1x32xf32>
    %26 = vector.broadcast %25 : vector<1x32xf32> to vector<8x32xf32>
    %27 = arith.addf %24, %26 : vector<8x32xf32>
    %cst_22 = arith.constant 0.000000e+00 : f32
    %28 = vector.broadcast %cst_22 : f32 to vector<8x32xf32>
    %29 = arith.maximumf %27, %28 : vector<8x32xf32>
    %30 = arith.truncf %29 : vector<8x32xf32> to vector<8x32xbf16>
    %c0_23 = arith.constant 0 : index
    %c0_24 = arith.constant 0 : index
    %31 = vector.load %arg10[%c0_23, %c0_24] : memref<32x64xbf16, #tpu.memory_space<vmem>>, vector<32x64xbf16>
    %cst_25 = arith.constant dense<0.000000e+00> : vector<8x64xf32>
    %32 = tpu.matmul %30, %31, %cst_25 {dimension_numbers = #tpu.dot_dimension_numbers<[1], [0], [0], [1], [0, 0, 1, 1], [], []>} : vector<8x32xbf16>, vector<32x64xbf16>, vector<8x64xf32> -> vector<8x64xf32>
    %c0_26 = arith.constant 0 : index
    %c0_27 = arith.constant 0 : index
    %33 = vector.load %arg11[%c0_26, %c0_27] : memref<1x64xf32, #tpu.memory_space<vmem>>, vector<1x64xf32>
    %34 = vector.broadcast %33 : vector<1x64xf32> to vector<8x64xf32>
    %35 = arith.addf %32, %34 : vector<8x64xf32>
    %36 = vector.extract_strided_slice %19 {offsets = [0, 0], sizes = [8, 64], strides = [1, 1]} : vector<8x96xf32> to vector<8x64xf32>
    %37 = arith.addf %35, %36 : vector<8x64xf32>
    %c0_28 = arith.constant 0 : index
    %c0_29 = arith.constant 0 : index
    %38 = vector.load %arg12[%c0_28, %c0_29] : memref<8x64xf32, #tpu.memory_space<vmem>>, vector<8x64xf32>
    tpu.vector_store %arg12[%c0_28, %c0_29], %37 {strides = array<i32>} : memref<8x64xf32, #tpu.memory_space<vmem>>, vector<8x64xf32>,
    return
  }
  func.func @transform_0(%arg0: i32) -> (i32, i32) {
    %c0_i32 = arith.constant 0 : i32
    %c0_i32_0 = arith.constant 0 : i32
    return %arg0, %c0_i32 : i32, i32
  }
  func.func @transform_1(%arg0: i32) -> (i32, i32) {
    %c0_i32 = arith.constant 0 : i32
    %c0_i32_0 = arith.constant 0 : i32
    return %arg0, %c0_i32 : i32, i32
  }
  func.func @transform_2(%arg0: i32) -> (i32, i32) {
    %c0_i32 = arith.constant 0 : i32
    %c0_i32_0 = arith.constant 0 : i32
    %c0_i32_1 = arith.constant 0 : i32
    return %c0_i32, %c0_i32_0 : i32, i32
  }
  func.func @transform_3(%arg0: i32) -> (i32, i32) {
    %c0_i32 = arith.constant 0 : i32
    %c0_i32_0 = arith.constant 0 : i32
    %c0_i32_1 = arith.constant 0 : i32
    return %c0_i32, %c0_i32_0 : i32, i32
  }
  func.func @transform_4(%arg0: i32) -> (i32, i32) {
    %c0_i32 = arith.constant 0 : i32
    %c0_i32_0 = arith.constant 0 : i32
    %c0_i32_1 = arith.constant 0 : i32
    return %c0_i32, %c0_i32_0 : i32, i32
  }
  func.func @transform_5(%arg0: i32) -> (i32, i32) {
    %c0_i32 = arith.constant 0 : i32
    %c0_i32_0 = arith.constant 0 : i32
    %c0_i32_1 = arith.constant 0 : i32
    return %c0_i32, %c0_i32_0 : i32, i32
  }
  func.func @transform_6(%arg0: i32) -> (i32, i32) {
    %c0_i32 = arith.constant 0 : i32
    %c0_i32_0 = arith.constant 0 : i32
    %c0_i32_1 = arith.constant 0 : i32
    return %c0_i32, %c0_i32_0 : i32, i32
  }
  func.func @transform_7(%arg0: i32) -> (i32, i32) {
    %c0_i32 = arith.constant 0 : i32
    %c0_i32_0 = arith.constant 0 : i32
    %c0_i32_1 = arith.constant 0 : i32
    return %c0_i32, %c0_i32_0 : i32, i32
  }
  func.func @transform_8(%arg0: i32) -> (i32, i32) {
    %c0_i32 = arith.constant 0 : i32
    %c0_i32_0 = arith.constant 0 : i32
    %c0_i32_1 = arith.constant 0 : i32
    return %c0_i32, %c0_i32_0 : i32, i32
  }
  func.func @transform_9(%arg0: i32) -> (i32, i32) {
    %c0_i32 = arith.constant 0 : i32
    %c0_i32_0 = arith.constant 0 : i32
    %c0_i32_1 = arith.constant 0 : i32
    return %c0_i32, %c0_i32_0 : i32, i32
  }
  func.func @transform_10(%arg0: i32) -> (i32, i32) {
    %c0_i32 = arith.constant 0 : i32
    %c0_i32_0 = arith.constant 0 : i32
    %c0_i32_1 = arith.constant 0 : i32
    return %c0_i32, %c0_i32_0 : i32, i32
  }
  func.func @transform_11(%arg0: i32) -> (i32, i32) {
    %c0_i32 = arith.constant 0 : i32
    %c0_i32_0 = arith.constant 0 : i32
    return %arg0, %c0_i32 : i32, i32
  }
}

</mosaic_0001>

<bundles_post_ra>
// kernel: tpu_custom_call.1
= control target key start
LH: loop header
LB: loop body
LE: loop exit
PB: predicated region body
PF: predicated region fallthrough
CT: control target
= control target key end

     0   :  { %vm55_vm0 = vcmask 1042432   ;;  %v539_v2 = vmov 0.0   ;;  %vm540_vm1 = vmmov 0   ;;  %vm51_vm2 = vcmask 48128   ;;  %s679_s0 = inlined_call_operand.vmem [shape: f32[8,32], index: 0, kind: input, shape index: {}]   ;;  %s680_s1 = inlined_call_operand.vmem [shape: f32[8,6], index: 1, kind: input, shape index: {}]   ;;  %s681_s2 = inlined_call_operand.vmem [shape: bf16[6,32], index: 2, kind: input, shape index: {}]   ;;  %s682_s3 = inlined_call_operand.vmem [shape: f32[1,32], index: 3, kind: input, shape index: {}]   ;;  %s683_s4 = inlined_call_operand.vmem [shape: bf16[32,96], index: 4, kind: input, shape index: {}]   ;;  %s684_s5 = inlined_call_operand.vmem [shape: bf16[32,96], index: 5, kind: input, shape index: {}]   ;;  %s685_s6 = inlined_call_operand.vmem [shape: f32[1,96], index: 6, kind: input, shape index: {}]   ;;  %s686_s7 = inlined_call_operand.vmem [shape: bf16[96,32], index: 7, kind: input, shape index: {}]   ;;  %s687_s8 = inlined_call_operand.vmem [shape: f32[1,32], index: 8, kind: input, shape index: {}]   ;;  %s688_s9 = inlined_call_operand.vmem [shape: bf16[32,64], index: 9, kind: input, shape index: {}]   ;;  %s689_s10 = inlined_call_operand.vmem [shape: f32[1,64], index: 10, kind: input, shape index: {}]   ;;  %s690_s11 = inlined_call_operand.hbm [shape: f32[8,64], index: 11, kind: output, shape index: {}]  }
   0x1   :  { %v43_v0 = vld [vmem:[%s681_s2] sm:$0x7]  ;;  %454 = vmatprep.subr.bf16.mxu0 %v539_v2  ;;  %456 = vmatprep.mubr.msk.bf16.mxu0 %vm540_vm1, %v539_v2 }
   0x2   :  { %v41_v1 = vld [vmem:[%s680_s1] sm:$0xff]  ;;  %v57_v3 = vsel %vm55_vm0, %v43_v0, 0  ;;  %476 = vmatprep.subr.bf16.mxu1 %v539_v2  ;;  %488 = vmatprep.mubr.msk.bf16.mxu1 %vm540_vm1, %v539_v2 }
   0x3   :  { %v42_v4 = vpack.c.bf16 %v41_v1, %v41_v1  ;;  %455 = vmatpush3.bf16.msra.mxu0 %v57_v3  ;;  %v503_v5 = vld [vmem:[%s684_s5] sm:$0xff]  }
   0x4   :  { %460 = vmatprep.subr.bf16.mxu0 %v539_v2 }
   0x6   :  { %457 = vmatmul.mubr.msk.bf16.vlgmr.msra.gmra.mrb[0].mxu0 %vm51_vm2, %v42_v4 }
   0x7   :  { %461 = vmatpush3.bf16.msra.mxu0 %v503_v5  ;;  %464 = vmatprep.mubr.msk.bf16.mxu0 %vm540_vm1, %v539_v2 }
   0x8   :  { %462 = vmatprep.subr.bf16.mxu0 %v539_v2 }
   0x9   :  { %16 = vsyncpa [#allocation3], 0  ;;  %v504_v6 = vld [vmem:[%s684_s5 + $0x8] sm:$0xff]   ;;  %v507_v7 = vld [vmem:[%s686_s7] sm:$0xff]   ;;  %vm122_vm3 = vcmask 261120   ;;  %vm286_vm4 = vcmask 785408  }
   0xa   :  { %477 = vmatpush3.bf16.msra.mxu1 %v507_v7  ;;  %v508_v8 = vld [vmem:[%s686_s7 + $0x8] sm:$0xff]   ;;  %v415_v9 = vld [vmem:[%s682_s3] ss:$0 sm:$0xff]  ;;  %v509_v21 = vld [vmem:[%s686_s7 + $0x10] sm:$0xff]   ;;  %vm399_vm5 = vcmask 523264  }
   0xb   :  { %463 = vmatpush3.bf16.msra.mxu0 %v504_v6  ;;  %478 = vmatprep.subr.bf16.mxu1 %v539_v2  ;;  %v505_v16 = vld [vmem:[%s683_s4] sm:$0xff]   ;;  %v506_v18 = vld [vmem:[%s683_s4 + $0x8] sm:$0xff]   ;;  %v510_v22 = vld [vmem:[%s686_s7 + $0x18] sm:$0xff]  }
   0xc   :  { %468 = vmatprep.subr.bf16.mxu0 %v539_v2  ;;  %v40_v19 = vld [vmem:[%s679_s0] sm:$0xff]  ;;  %v512_v24 = vld [vmem:[%s686_s7 + $0x28] sm:$0xff]  }
   0xd   :  { %v100_v20 = vpack.c.bf16 %v40_v19, %v40_v19  ;;  %v511_v23 = vld [vmem:[%s686_s7 + $0x20] sm:$0xff]   ;;  %v514_v39 = vld [vmem:[%s688_s9 + $0x8] sm:$0xff]  }
   0xe   :  { %479 = vmatpush3.bf16.msra.mxu1 %v508_v8  ;;  %v513_v25 = vld [vmem:[%s688_s9] sm:$0xff]   ;;  %s541_s9 = smov [#allocation2]  }
   0xf   :  { %480 = vmatprep.subr.bf16.mxu1 %v539_v2  ;;  %v423_v31 = vld [vmem:[%s685_s6] ss:$0 sm:$0xff]  ;;  %s407_s26 = sshll.u32 %s541_s9, 4  ;;  %s408_s26 = int_to_ptr.vmem [resolvable:$true] %s407_s26 }
  0x10   :  { %v424_v40 = vld [vmem:[%s687_s8] ss:$0 sm:$0xff]  ;;  %s515_s8 = scalar_lea.vmem %s408_s26, 128  ;;  %p520_p1 = scmp.lt.s32.totalorder %s408_s26, %s408_s26 }
  0x11   :  { %v432_v48 = vld [vmem:[%s689_s10] ss:$0 sm:$0xff]  ;;  %p516_p0 = scmp.ne.s32.totalorder %s408_s26, %s515_s8  ;;  %p521_p2 = scmp.lt.s32.totalorder %s515_s8, %s515_s8 }
  0x12   :  { %481 = vmatpush3.bf16.msra.mxu1 %v509_v21 }
  0x13   :  { %482 = vmatprep.subr.bf16.mxu1 %v539_v2  ;;  %p522_p3 = por %p521_p2, %p520_p1 }
  0x15   :  { %p523_p4 = pnand %p522_p3, %p516_p0 }
  0x16   :  { %483 = vmatpush3.bf16.msra.mxu1 %v510_v22 }
  0x17   :  { %484 = vmatprep.subr.bf16.mxu1 %v539_v2 }
  0x1a   :  { %485 = vmatpush3.bf16.msra.mxu1 %v511_v23 }
  0x1b   :  { %486 = vmatprep.subr.bf16.mxu1 %v539_v2 }
  0x1e   :  { %487 = vmatpush3.bf16.msra.mxu1 %v512_v24 }
  0xd9   :  { %v93_v10 = vpop.f32.mrb[0].mxu0 }
  0xda   :  { %v94_v11 = vadd.f32 %v415_v9, %v93_v10  ;;  %v458_v12 = vpop.f32.mrb[1].mxu0 }
  0xdb   :  { %v96_v13 = vpop.f32.mrb[2].mxu0 }
  0xdc   :  { %v99_v14 = vmax.f32 %v94_v11, 0.0  ;;  %v459_v15 = vpop.f32.mrb[3].mxu0 }
  0xde   :  { %v105_v17 = vpack.c.bf16 %v99_v14, %v99_v14 }
  0xe0   :  { %465 = vmatmul.mubr.msk.bf16.vlgmr.msra.gmra.mrb[4].mxu0 %vm122_vm3, %v105_v17 }
  0xe1   :  { %469 = vmatpush3.bf16.msra.mxu0 %v505_v16  ;;  %472 = vmatprep.mubr.msk.bf16.mxu0 %vm540_vm1, %v539_v2 }
  0xe2   :  { %470 = vmatprep.subr.bf16.mxu0 %v539_v2 }
  0xe5   :  { %471 = vmatpush3.bf16.msra.mxu0 %v506_v18 }
  0xe6   :  { %492 = vmatprep.subr.bf16.mxu0 %v539_v2 }
  0xe8   :  { %473 = vmatmul.mubr.msk.bf16.vlgmr.msra.gmra.mrb[8].mxu0 %vm122_vm3, %v100_v20 }
  0xe9   :  { %496 = vmatprep.mubr.msk.bf16.mxu0 %vm540_vm1, %v539_v2  ;;  %493 = vmatpush3.bf16.msra.mxu0 %v513_v25 }
  0xea   :  { %494 = vmatprep.subr.bf16.mxu0 %v539_v2 }
  0xed   :  { %495 = vmatpush3.bf16.msra.mxu0 %v514_v39 }
 0x1b3   :  { %v160_v26 = vpop.f32.mrb[4].mxu0 }
 0x1b4   :  { %v466_v27 = vpop.f32.mrb[5].mxu0 }
 0x1b5   :  { %v163_v28 = vpop.f32.mrb[6].mxu0 }
 0x1b6   :  { %v467_v29 = vpop.f32.mrb[7].mxu0 }
 0x1bb   :  { %v215_v30 = vpop.f32.mrb[8].mxu0 }
 0x1bc   :  { %v216_v32 = vadd.f32 %v215_v30, %v160_v26  ;;  %v474_v33 = vpop.f32.mrb[9].mxu0 }
 0x1bd   :  { %v218_v34 = vpop.f32.mrb[10].mxu0 }
 0x1be   :  { %v228_v35 = vadd.f32 %v423_v31, %v216_v32  ;;  %v475_v36 = vpop.f32.mrb[11].mxu0 }
 0x1c0   :  { %v229_v37 = vmax.f32 %v228_v35, 0.0 }
 0x1c2   :  { %v230_v38 = vpack.c.bf16 %v229_v37, %v229_v37 }
 0x1c4   :  { %489 = vmatmul.mubr.msk.bf16.vlgmr.msra.gmra.mrb[0].mxu1 %vm286_vm4, %v230_v38 }
 0x297   :  { %v324_v41 = vpop.f32.mrb[0].mxu1 }
 0x298   :  { %v325_v42 = vadd.f32 %v424_v40, %v324_v41  ;;  %v490_v43 = vpop.f32.mrb[1].mxu1 }
 0x299   :  { %v327_v44 = vpop.f32.mrb[2].mxu1 }
 0x29a   :  { %v330_v45 = vmax.f32 %v325_v42, 0.0  ;;  %v491_v46 = vpop.f32.mrb[3].mxu1 }
 0x29c   :  { %v331_v47 = vpack.c.bf16 %v330_v45, %v330_v45 }
 0x29e   :  { %497 = vmatmul.mubr.msk.bf16.vlgmr.msra.gmra.mrb[12].mxu0 %vm122_vm3, %v331_v47 }
 0x371   :  { %v392_v49 = vpop.f32.mrb[12].mxu0 }
 0x372   :  { %v393_v50 = vadd.f32 %v432_v48, %v392_v49  ;;  %v498_v51 = vpop.f32.mrb[13].mxu0 }
 0x373   :  { %v395_v52 = vpop.f32.mrb[14].mxu0 }
 0x374   :  { %v398_v53 = vadd.f32 %v393_v50, %v228_v35  ;;  %v499_v54 = vpop.f32.mrb[15].mxu0 }
 0x376   :  { %400 = vst.msk [vmem:[#allocation2] sm:$0xff] %vm399_vm5, %v398_v53 }
 0x377   :  { %526 = shalt.err (!%p523_p4)
}
 0x378   :  { %s527_s28 = scalar_lea.hbm %s690_s11, 128 }
 0x379   :  { %p528_p5 = scmp.ne.s32.totalorder %s690_s11, %s527_s28  ;;  %p531_p6 = scmp.lt.u32.totalorder %s527_s28, %s690_s11 }
 0x37b   :  { %p533_p7 = pnand %p531_p6, %p528_p5 }
 0x37d   :  { %536 = shalt.err (!%p533_p7)
}
 0x37e   :  { %410 = dma.vmem_to_hbm [thread:$0]  %s408_s26, 128, %s690_s11, [#allocation3]  }
 0x37f   :  { %537 = dma.done.wait [#allocation3], 128  }
 0x380   :  { %538 = vsyncadd [#allocation3], 4294967168 }
 0x381   :  { %414 = vsyncpa [#allocation3], 1 }

</bundles_post_ra>
